<compile_context>
chip_gen: v5e
topology: v5e:2x2
jax: 0.10.0
libtpu: 0.0.40
codegen_flags: <defaults>
</compile_context>

<pallas_src>
import functools

import jax
import jax.numpy as jnp
from jax.experimental import pallas as pl
from jax.experimental.pallas import tpu as pltpu

LANE = 128     # vreg lane width     (last-dim quantum)
SUBLANE = 8    # vreg sublane width  (second-to-last-dim quantum)


def _round_up(x, m):
    return ((x + m - 1) // m) * m


def _cdiv(a, b):
    return (a + b - 1) // b


def _vmem_capacity_bytes():
    try:
        return int(pltpu.get_tpu_info().vmem_capacity_bytes)
    except Exception:
        return 64 * 1024 * 1024   # conservative: v7x per-TensorCore VMEM


# ---------------------------------------------------------------------------
# Kernel: the whole MLP on one batch tile.  All layer weights/biases are VMEM
# residents (constant index_map); intermediate activations stay in vregs.
# ---------------------------------------------------------------------------
def _mlp_fused_kernel(x_ref, *refs, num_layers):
    """
    x_ref : (TM, D0)            VMEM
    refs  : w0, b0, ..., o_ref  VMEM
            w_l : (K_l, N_l)    (K_0 = D0 unpadded, hidden N lane-padded)
            b_l : (1,  N_l)     float32
    o_ref : (TM, D_out)         VMEM
    """
    o_ref = refs[-1]
    h = x_ref[...]
    for l in range(num_layers):
        w = refs[2 * l][...]
        b = refs[2 * l + 1][...]                       # (1, N_l) f32
        # MXU matmul with f32 accumulation; bias/ReLU in f32 on the VPU.
        h = jnp.dot(h.astype(w.dtype), w, preferred_element_type=jnp.float32)
        h = h + b
        if l < num_layers - 1:
            h = jnp.maximum(h, 0.0)                    # ReLU on hidden layers
    o_ref[...] = h.astype(o_ref.dtype)


# ---------------------------------------------------------------------------
# One-time parameter prep (hoisted out of the per-call hot path).
# ---------------------------------------------------------------------------
def prepare_mlp_params(params, *, compute_dtype=None):
    """Pad weights/biases once to TPU-friendly shapes and optionally cast the
    weights to `compute_dtype` (e.g. jnp.bfloat16 for the bf16 MXU path).

    Padding is exact: padded input columns of a layer multiply zero weight
    rows, padded output columns get zero weights + zero bias, and ReLU(0)=0,
    so the real outputs are unchanged.

    params : list of (w, b) with w: (din, dout), b: (dout,)
    """
    num_layers = len(params)
    assert num_layers >= 1
    dims = [params[0][0].shape[0]] + [w.shape[1] for (w, _) in params]
    # Hidden activations are lane-dense (multiple of 128); the kernel input
    # keeps its real K and the final layer keeps its real output width.
    dims_p = [dims[0]] + [_round_up(d, LANE) for d in dims[1:-1]] + [dims[-1]]

    operands = []
    for l, (w, b) in enumerate(params):
        din, dout = w.shape
        assert din == dims[l] and dout == dims[l + 1]
        wdt = jnp.dtype(compute_dtype) if compute_dtype is not None else w.dtype
        kp, np_ = dims_p[l], dims_p[l + 1]
        wp = (jnp.zeros((kp, np_), dtype=wdt)
              .at[:din, :dout].set(w.astype(wdt)))
        bp = (jnp.zeros((1, np_), dtype=jnp.float32)
              .at[0, :dout].set(b.reshape(-1).astype(jnp.float32)))
        operands += [wp, bp]

    return {
        "operands": tuple(operands),
        "dims": tuple(dims),
        "dims_p": tuple(dims_p),
        "num_layers": num_layers,
    }


# ---------------------------------------------------------------------------
# Forward pass.
# ---------------------------------------------------------------------------
def mlp_forward(x, prepared, *, block_m=512, out_dtype=None):
    """Fused Pallas forward pass.

    x        : (B, Din)
    prepared : output of prepare_mlp_params
    """
    B, Din = x.shape
    dims, dims_p = prepared["dims"], prepared["dims_p"]
    num_layers = prepared["num_layers"]
    operands = prepared["operands"]
    assert Din == dims[0], f"x feature dim {Din} != MLP input dim {dims[0]}"
    out_dtype = jnp.dtype(out_dtype) if out_dtype is not None else x.dtype
    d_out = dims_p[-1]

    # ---- batch tiling ------------------------------------------------------
    # Big tiles amortize the ~0.35us/step grid overhead, but keep >= 2 tiles
    # whenever the batch can be split so both v7x TensorCores get work.  tm is
    # chosen adaptively so last-tile padding waste stays < 8 rows per tile.
    target_tm = block_m
    if B > 2 * SUBLANE:
        target_tm = min(target_tm, _round_up(_cdiv(B, 2), SUBLANE))
    grid_m = _cdiv(B, target_tm)
    tm = _round_up(_cdiv(B, grid_m), SUBLANE)
    Bp = tm * grid_m

    xp = x if Bp == B else jnp.pad(x, ((0, Bp - B), (0, 0)))

    # ---- BlockSpecs ----------------------------------------------------------
    def make_in_specs(weight_buffer_count):
        wb_kwargs = ({} if weight_buffer_count is None
                     else {"pipeline_mode": pl.Buffered(weight_buffer_count)})
        specs = [pl.BlockSpec((tm, dims_p[0]), lambda i: (i, 0))]
        for l in range(num_layers):
            # Constant index_map -> block stays resident across batch tiles.
            specs.append(pl.BlockSpec((dims_p[l], dims_p[l + 1]),
                                      lambda i: (0, 0), **wb_kwargs))
            specs.append(pl.BlockSpec((1, dims_p[l + 1]),
                                      lambda i: (0, 0), **wb_kwargs))
        return specs

    out_spec = pl.BlockSpec((tm, d_out), lambda i: (i, 0))

    # ---- advisory cost + VMEM budget ----------------------------------------
    flops = 2 * Bp * sum(dims_p[l] * dims_p[l + 1] for l in range(num_layers))
    weight_bytes = sum(o.size * o.dtype.itemsize for o in operands)
    bytes_accessed = (xp.size * xp.dtype.itemsize + weight_bytes
                      + Bp * d_out * out_dtype.itemsize)

    io_tile_bytes = 2 * tm * (dims_p[0] * xp.dtype.itemsize
                              + d_out * out_dtype.itemsize)   # double-buffered x/out
    act_bytes = 2 * tm * max(dims_p) * 4                      # live f32 activations

    def vmem_limit(weight_buffer_count):
        wfac = 2 if weight_buffer_count is None else weight_buffer_count
        needed = io_tile_bytes + wfac * weight_bytes + act_bytes
        cap = _vmem_capacity_bytes() - (4 << 20)
        return int(min(cap, max(2 * needed + (4 << 20), 32 << 20)))

    kernel = functools.partial(_mlp_fused_kernel, num_layers=num_layers)

    def call(weight_buffer_count):
        return pl.pallas_call(
            kernel,
            out_shape=jax.ShapeDtypeStruct((Bp, d_out), out_dtype),
            grid=(grid_m,),
            in_specs=make_in_specs(weight_buffer_count),
            out_specs=out_spec,
            compiler_params=pltpu.CompilerParams(
                dimension_semantics=("parallel",),   # batch tiles -> both TCs on v7x
                vmem_limit_bytes=vmem_limit(weight_buffer_count),
            ),
            cost_estimate=pl.CostEstimate(
                flops=flops, transcendentals=0, bytes_accessed=bytes_accessed),
        )(xp, *operands)

    try:
        # Single-buffer the resident weights/biases (constant index_map).
        yp = call(1)
    except Exception:
        # Fallback for jax builds without BlockSpec.pipeline_mode / Buffered(1).
        yp = call(None)

    return yp if Bp == B else yp[:B]


# ---------------------------------------------------------------------------
# Init + pure-JAX reference (mirror of the PyTorch module).
# ---------------------------------------------------------------------------
def init_mlp_params(key, layerdims, init_scale=0.001, dtype=jnp.float32):
    """weight ~ N(0, (init_scale/sqrt(fan_in))^2), bias = 0; stored as (in, out)."""
    params = []
    for l in range(len(layerdims) - 1):
        key, wkey = jax.random.split(key)
        fan_in, fan_out = layerdims[l], layerdims[l + 1]
        std = init_scale / jnp.sqrt(jnp.array(fan_in, dtype=jnp.float32))
        w = (jax.random.normal(wkey, (fan_in, fan_out), dtype=jnp.float32) * std).astype(dtype)
        b = jnp.zeros((fan_out,), dtype=dtype)
        params.append((w, b))
    return params


def mlp_forward_ref(x, params, compute_dtype=None):
    """Pure-JAX reference (matches MLP.forward: ReLU on all but the last layer)."""
    n = len(params)
    h = x
    for i, (w, b) in enumerate(params):
        if compute_dtype is not None:
            h = h.astype(compute_dtype)
            w = w.astype(compute_dtype)
        h = jnp.dot(h, w, preferred_element_type=jnp.float32) + b.astype(jnp.float32)
        if i < n - 1:
            h = jnp.maximum(h, 0.0)
    return h


if __name__ == "__main__":
    key = jax.random.PRNGKey(0)
    layerdims = [16, 32, 32, 8]                    # small MLP: 16 -> 32 -> 32 -> 8
    pkey, pkey2, xkey, xkey2 = jax.random.split(key, 4)

    params = init_mlp_params(pkey, layerdims, init_scale=0.001)
    prepared = prepare_mlp_params(params)          # one-time prep (f32 weights)

    # Case 1: tiny batch (single batch tile).
    batch = 8
    x = jax.random.normal(xkey, (batch, layerdims[0]), dtype=jnp.float32)
    y = jax.block_until_ready(mlp_forward(x, prepared))
    y_ref = mlp_forward_ref(x, params)
    assert y.shape == (batch, layerdims[-1])
    assert jnp.allclose(y, y_ref, atol=1e-5, rtol=1e-5), "mismatch (batch=8, f32)"

    # Case 2: batch larger than one tile and not a multiple of the tile size
    # (exercises the adaptive batch grid: 2 "parallel" tiles of 136 rows).
    batch2 = 260
    x2 = jax.random.normal(xkey2, (batch2, layerdims[0]), dtype=jnp.float32)
    y2 = jax.block_until_ready(mlp_forward(x2, prepared))
    y2_ref = mlp_forward_ref(x2, params)
    assert y2.shape == (batch2, layerdims[-1])
    assert jnp.allclose(y2, y2_ref, atol=1e-5, rtol=1e-5), "mismatch (batch=260, f32)"

    # Case 3: bf16 MXU path (weights + matmul inputs in bf16, f32 accumulate +
    # f32 bias/ReLU epilogue).  Compared against a reference with identical
    # quantization points, so only MXU-vs-XLA accumulation order differs.
    params_b = init_mlp_params(pkey2, layerdims, init_scale=0.1)
    prepared_b = prepare_mlp_params(params_b, compute_dtype=jnp.bfloat16)
    y3 = jax.block_until_ready(mlp_forward(x, prepared_b))
    y3_ref = mlp_forward_ref(x, params_b, compute_dtype=jnp.bfloat16)
    assert y3.shape == (batch, layerdims[-1])
    assert jnp.allclose(y3, y3_ref, atol=1e-4, rtol=1e-2), "mismatch (batch=8, bf16)"

    print("KERNEL_OK")
</pallas_src>

<mosaic_0001>
module attributes {stable_mosaic.version = 11 : i64} {
  func.func @_mlp_fused_kernel(%arg0: i32, %arg1: memref<8x16xf32, #tpu.memory_space<vmem>>, %arg2: memref<16x128xf32, #tpu.memory_space<vmem>>, %arg3: memref<1x128xf32, #tpu.memory_space<vmem>>, %arg4: memref<128x128xf32, #tpu.memory_space<vmem>>, %arg5: memref<1x128xf32, #tpu.memory_space<vmem>>, %arg6: memref<128x8xf32, #tpu.memory_space<vmem>>, %arg7: memref<1x8xf32, #tpu.memory_space<vmem>>, %arg8: memref<8x8xf32, #tpu.memory_space<vmem>>) attributes {dimension_semantics = [#tpu.dimension_semantics<parallel>], iteration_bounds = array<i64: 1>, scalar_prefetch = 0 : i64, scratch_operands = 0 : i64, tpu.core_type = #tpu.core_type<tc>, window_params = [{transform_indices = @transform_0, window_bounds = array<i64: 8, 16>}, {pipeline_mode = #tpu.pipeline_mode<synchronous>, transform_indices = @transform_1, window_bounds = array<i64: 16, 128>}, {pipeline_mode = #tpu.pipeline_mode<synchronous>, transform_indices = @transform_2, window_bounds = array<i64: 1, 128>}, {pipeline_mode = #tpu.pipeline_mode<synchronous>, transform_indices = @transform_3, window_bounds = array<i64: 128, 128>}, {pipeline_mode = #tpu.pipeline_mode<synchronous>, transform_indices = @transform_4, window_bounds = array<i64: 1, 128>}, {pipeline_mode = #tpu.pipeline_mode<synchronous>, transform_indices = @transform_5, window_bounds = array<i64: 128, 8>}, {pipeline_mode = #tpu.pipeline_mode<synchronous>, transform_indices = @transform_6, window_bounds = array<i64: 1, 8>}, {transform_indices = @transform_7, window_bounds = array<i64: 8, 8>}]} {
    %c0 = arith.constant 0 : index
    %c0_0 = arith.constant 0 : index
    %0 = vector.load %arg1[%c0, %c0_0] : memref<8x16xf32, #tpu.memory_space<vmem>>, vector<8x16xf32>
    %c0_1 = arith.constant 0 : index
    %c0_2 = arith.constant 0 : index
    %1 = vector.load %arg2[%c0_1, %c0_2] : memref<16x128xf32, #tpu.memory_space<vmem>>, vector<16x128xf32>
    %c0_3 = arith.constant 0 : index
    %c0_4 = arith.constant 0 : index
    %2 = vector.load %arg3[%c0_3, %c0_4] : memref<1x128xf32, #tpu.memory_space<vmem>>, vector<1x128xf32>
    %cst = arith.constant dense<0.000000e+00> : vector<8x128xf32>
    %3 = tpu.matmul %0, %1, %cst {dimension_numbers = #tpu.dot_dimension_numbers<[1], [0], [0], [1], [0, 0, 1, 1], [], []>} : vector<8x16xf32>, vector<16x128xf32>, vector<8x128xf32> -> vector<8x128xf32>
    %4 = vector.broadcast %2 : vector<1x128xf32> to vector<8x128xf32>
    %5 = arith.addf %3, %4 : vector<8x128xf32>
    %cst_5 = arith.constant 0.000000e+00 : f32
    %6 = vector.broadcast %cst_5 : f32 to vector<8x128xf32>
    %7 = arith.maximumf %5, %6 : vector<8x128xf32>
    %c0_6 = arith.constant 0 : index
    %c0_7 = arith.constant 0 : index
    %8 = vector.load %arg4[%c0_6, %c0_7] : memref<128x128xf32, #tpu.memory_space<vmem>>, vector<128x128xf32>
    %c0_8 = arith.constant 0 : index
    %c0_9 = arith.constant 0 : index
    %9 = vector.load %arg5[%c0_8, %c0_9] : memref<1x128xf32, #tpu.memory_space<vmem>>, vector<1x128xf32>
    %cst_10 = arith.constant dense<0.000000e+00> : vector<8x128xf32>
    %10 = tpu.matmul %7, %8, %cst_10 {dimension_numbers = #tpu.dot_dimension_numbers<[1], [0], [0], [1], [0, 0, 1, 1], [], []>} : vector<8x128xf32>, vector<128x128xf32>, vector<8x128xf32> -> vector<8x128xf32>
    %11 = vector.broadcast %9 : vector<1x128xf32> to vector<8x128xf32>
    %12 = arith.addf %10, %11 : vector<8x128xf32>
    %cst_11 = arith.constant 0.000000e+00 : f32
    %13 = vector.broadcast %cst_11 : f32 to vector<8x128xf32>
    %14 = arith.maximumf %12, %13 : vector<8x128xf32>
    %c0_12 = arith.constant 0 : index
    %c0_13 = arith.constant 0 : index
    %15 = vector.load %arg6[%c0_12, %c0_13] : memref<128x8xf32, #tpu.memory_space<vmem>>, vector<128x8xf32>
    %c0_14 = arith.constant 0 : index
    %c0_15 = arith.constant 0 : index
    %16 = vector.load %arg7[%c0_14, %c0_15] : memref<1x8xf32, #tpu.memory_space<vmem>>, vector<1x8xf32>
    %cst_16 = arith.constant dense<0.000000e+00> : vector<8x8xf32>
    %17 = tpu.matmul %14, %15, %cst_16 {dimension_numbers = #tpu.dot_dimension_numbers<[1], [0], [0], [1], [0, 0, 1, 1], [], []>} : vector<8x128xf32>, vector<128x8xf32>, vector<8x8xf32> -> vector<8x8xf32>
    %18 = vector.broadcast %16 : vector<1x8xf32> to vector<8x8xf32>
    %19 = arith.addf %17, %18 : vector<8x8xf32>
    %c0_17 = arith.constant 0 : index
    %c0_18 = arith.constant 0 : index
    %20 = vector.load %arg8[%c0_17, %c0_18] : memref<8x8xf32, #tpu.memory_space<vmem>>, vector<8x8xf32>
    tpu.vector_store %arg8[%c0_17, %c0_18], %19 {strides = array<i32>} : memref<8x8xf32, #tpu.memory_space<vmem>>, vector<8x8xf32>,
    return
  }
  func.func @transform_0(%arg0: i32) -> (i32, i32) {
    %c0_i32 = arith.constant 0 : i32
    %c0_i32_0 = arith.constant 0 : i32
    return %arg0, %c0_i32 : i32, i32
  }
  func.func @transform_1(%arg0: i32) -> (i32, i32) {
    %c0_i32 = arith.constant 0 : i32
    %c0_i32_0 = arith.constant 0 : i32
    %c0_i32_1 = arith.constant 0 : i32
    return %c0_i32, %c0_i32_0 : i32, i32
  }
  func.func @transform_2(%arg0: i32) -> (i32, i32) {
    %c0_i32 = arith.constant 0 : i32
    %c0_i32_0 = arith.constant 0 : i32
    %c0_i32_1 = arith.constant 0 : i32
    return %c0_i32, %c0_i32_0 : i32, i32
  }
  func.func @transform_3(%arg0: i32) -> (i32, i32) {
    %c0_i32 = arith.constant 0 : i32
    %c0_i32_0 = arith.constant 0 : i32
    %c0_i32_1 = arith.constant 0 : i32
    return %c0_i32, %c0_i32_0 : i32, i32
  }
  func.func @transform_4(%arg0: i32) -> (i32, i32) {
    %c0_i32 = arith.constant 0 : i32
    %c0_i32_0 = arith.constant 0 : i32
    %c0_i32_1 = arith.constant 0 : i32
    return %c0_i32, %c0_i32_0 : i32, i32
  }
  func.func @transform_5(%arg0: i32) -> (i32, i32) {
    %c0_i32 = arith.constant 0 : i32
    %c0_i32_0 = arith.constant 0 : i32
    %c0_i32_1 = arith.constant 0 : i32
    return %c0_i32, %c0_i32_0 : i32, i32
  }
  func.func @transform_6(%arg0: i32) -> (i32, i32) {
    %c0_i32 = arith.constant 0 : i32
    %c0_i32_0 = arith.constant 0 : i32
    %c0_i32_1 = arith.constant 0 : i32
    return %c0_i32, %c0_i32_0 : i32, i32
  }
  func.func @transform_7(%arg0: i32) -> (i32, i32) {
    %c0_i32 = arith.constant 0 : i32
    %c0_i32_0 = arith.constant 0 : i32
    return %arg0, %c0_i32 : i32, i32
  }
}

module attributes {stable_mosaic.version = 11 : i64} {
  func.func @_mlp_fused_kernel(%arg0: i32, %arg1: memref<8x16xf32, #tpu.memory_space<vmem>>, %arg2: memref<16x128xf32, #tpu.memory_space<vmem>>, %arg3: memref<1x128xf32, #tpu.memory_space<vmem>>, %arg4: memref<128x128xf32, #tpu.memory_space<vmem>>, %arg5: memref<1x128xf32, #tpu.memory_space<vmem>>, %arg6: memref<128x8xf32, #tpu.memory_space<vmem>>, %arg7: memref<1x8xf32, #tpu.memory_space<vmem>>, %arg8: memref<8x8xf32, #tpu.memory_space<vmem>>) attributes {dimension_semantics = [#tpu.dimension_semantics<parallel>], iteration_bounds = array<i64: 1>, scalar_prefetch = 0 : i64, scratch_operands = 0 : i64, tpu.core_type = #tpu.core_type<tc>, window_params = [{transform_indices = @transform_0, window_bounds = array<i64: 8, 16>}, {pipeline_mode = #tpu.pipeline_mode<synchronous>, transform_indices = @transform_1, window_bounds = array<i64: 16, 128>}, {pipeline_mode = #tpu.pipeline_mode<synchronous>, transform_indices = @transform_2, window_bounds = array<i64: 1, 128>}, {pipeline_mode = #tpu.pipeline_mode<synchronous>, transform_indices = @transform_3, window_bounds = array<i64: 128, 128>}, {pipeline_mode = #tpu.pipeline_mode<synchronous>, transform_indices = @transform_4, window_bounds = array<i64: 1, 128>}, {pipeline_mode = #tpu.pipeline_mode<synchronous>, transform_indices = @transform_5, window_bounds = array<i64: 128, 8>}, {pipeline_mode = #tpu.pipeline_mode<synchronous>, transform_indices = @transform_6, window_bounds = array<i64: 1, 8>}, {transform_indices = @transform_7, window_bounds = array<i64: 8, 8>}]} {
    %c0 = arith.constant 0 : index
    %c0_0 = arith.constant 0 : index
    %0 = vector.load %arg1[%c0, %c0_0] : memref<8x16xf32, #tpu.memory_space<vmem>>, vector<8x16xf32>
    %c0_1 = arith.constant 0 : index
    %c0_2 = arith.constant 0 : index
    %1 = vector.load %arg2[%c0_1, %c0_2] : memref<16x128xf32, #tpu.memory_space<vmem>>, vector<16x128xf32>
    %c0_3 = arith.constant 0 : index
    %c0_4 = arith.constant 0 : index
    %2 = vector.load %arg3[%c0_3, %c0_4] : memref<1x128xf32, #tpu.memory_space<vmem>>, vector<1x128xf32>
    %cst = arith.constant dense<0.000000e+00> : vector<8x128xf32>
    %3 = tpu.matmul %0, %1, %cst {dimension_numbers = #tpu.dot_dimension_numbers<[1], [0], [0], [1], [0, 0, 1, 1], [], []>} : vector<8x16xf32>, vector<16x128xf32>, vector<8x128xf32> -> vector<8x128xf32>
    %4 = vector.broadcast %2 : vector<1x128xf32> to vector<8x128xf32>
    %5 = arith.addf %3, %4 : vector<8x128xf32>
    %cst_5 = arith.constant 0.000000e+00 : f32
    %6 = vector.broadcast %cst_5 : f32 to vector<8x128xf32>
    %7 = arith.maximumf %5, %6 : vector<8x128xf32>
    %c0_6 = arith.constant 0 : index
    %c0_7 = arith.constant 0 : index
    %8 = vector.load %arg4[%c0_6, %c0_7] : memref<128x128xf32, #tpu.memory_space<vmem>>, vector<128x128xf32>
    %c0_8 = arith.constant 0 : index
    %c0_9 = arith.constant 0 : index
    %9 = vector.load %arg5[%c0_8, %c0_9] : memref<1x128xf32, #tpu.memory_space<vmem>>, vector<1x128xf32>
    %cst_10 = arith.constant dense<0.000000e+00> : vector<8x128xf32>
    %10 = tpu.matmul %7, %8, %cst_10 {dimension_numbers = #tpu.dot_dimension_numbers<[1], [0], [0], [1], [0, 0, 1, 1], [], []>} : vector<8x128xf32>, vector<128x128xf32>, vector<8x128xf32> -> vector<8x128xf32>
    %11 = vector.broadcast %9 : vector<1x128xf32> to vector<8x128xf32>
    %12 = arith.addf %10, %11 : vector<8x128xf32>
    %cst_11 = arith.constant 0.000000e+00 : f32
    %13 = vector.broadcast %cst_11 : f32 to vector<8x128xf32>
    %14 = arith.maximumf %12, %13 : vector<8x128xf32>
    %c0_12 = arith.constant 0 : index
    %c0_13 = arith.constant 0 : index
    %15 = vector.load %arg6[%c0_12, %c0_13] : memref<128x8xf32, #tpu.memory_space<vmem>>, vector<128x8xf32>
    %c0_14 = arith.constant 0 : index
    %c0_15 = arith.constant 0 : index
    %16 = vector.load %arg7[%c0_14, %c0_15] : memref<1x8xf32, #tpu.memory_space<vmem>>, vector<1x8xf32>
    %cst_16 = arith.constant dense<0.000000e+00> : vector<8x8xf32>
    %17 = tpu.matmul %14, %15, %cst_16 {dimension_numbers = #tpu.dot_dimension_numbers<[1], [0], [0], [1], [0, 0, 1, 1], [], []>} : vector<8x128xf32>, vector<128x8xf32>, vector<8x8xf32> -> vector<8x8xf32>
    %18 = vector.broadcast %16 : vector<1x8xf32> to vector<8x8xf32>
    %19 = arith.addf %17, %18 : vector<8x8xf32>
    %c0_17 = arith.constant 0 : index
    %c0_18 = arith.constant 0 : index
    %20 = vector.load %arg8[%c0_17, %c0_18] : memref<8x8xf32, #tpu.memory_space<vmem>>, vector<8x8xf32>
    tpu.vector_store %arg8[%c0_17, %c0_18], %19 {strides = array<i32>} : memref<8x8xf32, #tpu.memory_space<vmem>>, vector<8x8xf32>,
    return
  }
  func.func @transform_0(%arg0: i32) -> (i32, i32) {
    %c0_i32 = arith.constant 0 : i32
    %c0_i32_0 = arith.constant 0 : i32
    return %arg0, %c0_i32 : i32, i32
  }
  func.func @transform_1(%arg0: i32) -> (i32, i32) {
    %c0_i32 = arith.constant 0 : i32
    %c0_i32_0 = arith.constant 0 : i32
    %c0_i32_1 = arith.constant 0 : i32
    return %c0_i32, %c0_i32_0 : i32, i32
  }
  func.func @transform_2(%arg0: i32) -> (i32, i32) {
    %c0_i32 = arith.constant 0 : i32
    %c0_i32_0 = arith.constant 0 : i32
    %c0_i32_1 = arith.constant 0 : i32
    return %c0_i32, %c0_i32_0 : i32, i32
  }
  func.func @transform_3(%arg0: i32) -> (i32, i32) {
    %c0_i32 = arith.constant 0 : i32
    %c0_i32_0 = arith.constant 0 : i32
    %c0_i32_1 = arith.constant 0 : i32
    return %c0_i32, %c0_i32_0 : i32, i32
  }
  func.func @transform_4(%arg0: i32) -> (i32, i32) {
    %c0_i32 = arith.constant 0 : i32
    %c0_i32_0 = arith.constant 0 : i32
    %c0_i32_1 = arith.constant 0 : i32
    return %c0_i32, %c0_i32_0 : i32, i32
  }
  func.func @transform_5(%arg0: i32) -> (i32, i32) {
    %c0_i32 = arith.constant 0 : i32
    %c0_i32_0 = arith.constant 0 : i32
    %c0_i32_1 = arith.constant 0 : i32
    return %c0_i32, %c0_i32_0 : i32, i32
  }
  func.func @transform_6(%arg0: i32) -> (i32, i32) {
    %c0_i32 = arith.constant 0 : i32
    %c0_i32_0 = arith.constant 0 : i32
    %c0_i32_1 = arith.constant 0 : i32
    return %c0_i32, %c0_i32_0 : i32, i32
  }
  func.func @transform_7(%arg0: i32) -> (i32, i32) {
    %c0_i32 = arith.constant 0 : i32
    %c0_i32_0 = arith.constant 0 : i32
    return %arg0, %c0_i32 : i32, i32
  }
}

</mosaic_0001>

<bundles_post_ra>
// kernel: tpu_custom_call.1
= control target key start
LH: loop header
LB: loop body
LE: loop exit
PB: predicated region body
PF: predicated region fallthrough
CT: control target
= control target key end

     0   :  { %12 = vsyncpa [#allocation3], 0  ;;  %s393_s0 = inlined_call_operand.vmem [shape: f32[8,16], index: 0, kind: input, shape index: {}]   ;;  %s394_s1 = inlined_call_operand.hbm [shape: f32[16,128], index: 1, kind: input, shape index: {}]   ;;  %s395_s2 = inlined_call_operand.vmem [shape: f32[1,128], index: 2, kind: input, shape index: {}]   ;;  %s396_s3 = inlined_call_operand.vmem [shape: f32[128,128], index: 3, kind: input, shape index: {}]   ;;  %s397_s4 = inlined_call_operand.vmem [shape: f32[1,128], index: 4, kind: input, shape index: {}]   ;;  %s398_s5 = inlined_call_operand.vmem [shape: f32[128,8], index: 5, kind: input, shape index: {}]   ;;  %s399_s6 = inlined_call_operand.vmem [shape: f32[1,8], index: 6, kind: input, shape index: {}]   ;;  %s400_s7 = inlined_call_operand.hbm [shape: f32[8,8], index: 7, kind: output, shape index: {}]  }
   0x1   :  { %13 = vsyncpa [#allocation4], 0  ;;  %s20_s26 = sshll.u32 %s394_s1, 4  ;;  %s235_s27 = smov [#allocation2]   ;;  %s21_s26 = int_to_ptr.hbm [resolvable:$true] %s20_s26 }
   0x2   :  { %s22_s28 = sshll.u32 %s235_s27, 4  ;;  %s236_s29 = smov 128   ;;  %s23_s28 = int_to_ptr.vmem [resolvable:$true] %s22_s28 }
   0x3   :  { %s237_s30 = smov 8  }
   0x4   :  { %28 = dma.hbm_to_vmem [thread:$0]  %s21_s26, 256, %s23_s28, [#allocation3], %s236_s29, %s236_s29, %s237_s30  }
   0x5   :  { %231 = dma.done.wait [#allocation3], 256  }
   0x6   :  { %232 = vsyncadd [#allocation3], 4294967040  ;;  %v45_v0 = vld [vmem:[#allocation2 + $0x8] sm:$0xff]  ;;  %v44_v1 = vld [vmem:[#allocation2] sm:$0xff]  ;;  %vm50_vm0 = vcmask 130048   ;;  %s238_s25 = smov [#allocation5]  }
   0x7   :  { %68 = vmatpush.msra.mxu0 %v45_v0  ;;  %v43_v2 = vld [vmem:[%s393_s0] sm:$0xff]  ;;  %v90_v3 = vld [vmem:[%s396_s3 + $0x78] sm:$0xff]  ;;  %v89_v4 = vld [vmem:[%s396_s3 + $0x70] sm:$0xff]  ;;  %s163_s26 = sshll.u32 %s238_s25, 4  ;;  %s165_s29 = sshll.u32 %s400_s7, 4  ;;  %vm156_vm1 = vcmask 64512   ;;  %s164_s26 = int_to_ptr.vmem [resolvable:$true] %s163_s26  ;;  %s166_s29 = int_to_ptr.hbm [resolvable:$true] %s165_s29 }
   0x8   :  { %95 = vmatpush.msra.mxu1 %v90_v3  ;;  %v88_v5 = vld [vmem:[%s396_s3 + $0x68] sm:$0xff]  ;;  %v87_v6 = vld [vmem:[%s396_s3 + $0x60] sm:$0xff]  ;;  %v86_v7 = vld [vmem:[%s396_s3 + $0x58] sm:$0xff] }
   0x9   :  { %69 = vmatpush.msra.mxu0 %v44_v1  ;;  %v85_v8 = vld [vmem:[%s396_s3 + $0x50] sm:$0xff]  ;;  %v84_v9 = vld [vmem:[%s396_s3 + $0x48] sm:$0xff]  ;;  %v83_v10 = vld [vmem:[%s396_s3 + $0x40] sm:$0xff] }
   0xa   :  { %175 = vmatmul.msk.f32.vlgmr.msra.gmra.mxu0 %vm50_vm0, %v43_v2  ;;  %96 = vmatpush.msra.mxu1 %v89_v4  ;;  %v82_v11 = vld [vmem:[%s396_s3 + $0x38] sm:$0xff]  ;;  %v81_v12 = vld [vmem:[%s396_s3 + $0x30] sm:$0xff]  ;;  %v80_v13 = vld [vmem:[%s396_s3 + $0x28] sm:$0xff] }
   0xb   :  { %v79_v14 = vld [vmem:[%s396_s3 + $0x20] sm:$0xff]  ;;  %v78_v15 = vld [vmem:[%s396_s3 + $0x18] sm:$0xff]  ;;  %v77_v16 = vld [vmem:[%s396_s3 + $0x10] sm:$0xff] }
   0xc   :  { %97 = vmatpush.msra.mxu1 %v88_v5  ;;  %v76_v17 = vld [vmem:[%s396_s3 + $0x8] sm:$0xff]  ;;  %v75_v18 = vld [vmem:[%s396_s3] sm:$0xff]  ;;  %v131_v19 = vld [vmem:[%s398_s5 + $0x78] sm:$0xff] }
   0xd   :  { %v130_v20 = vld [vmem:[%s398_s5 + $0x70] sm:$0xff]  ;;  %136 = vmatpush.msra.mxu2 %v131_v19  ;;  %v129_v21 = vld [vmem:[%s398_s5 + $0x68] sm:$0xff]  ;;  %v128_v22 = vld [vmem:[%s398_s5 + $0x60] sm:$0xff] }
   0xe   :  { %98 = vmatpush.msra.mxu1 %v87_v6  ;;  %v127_v23 = vld [vmem:[%s398_s5 + $0x58] sm:$0xff]  ;;  %v126_v24 = vld [vmem:[%s398_s5 + $0x50] sm:$0xff]  ;;  %v125_v25 = vld [vmem:[%s398_s5 + $0x48] sm:$0xff] }
   0xf   :  { %137 = vmatpush.msra.mxu2 %v130_v20  ;;  %v124_v26 = vld [vmem:[%s398_s5 + $0x40] sm:$0xff]  ;;  %v123_v27 = vld [vmem:[%s398_s5 + $0x38] sm:$0xff]  ;;  %v122_v28 = vld [vmem:[%s398_s5 + $0x30] sm:$0xff] }
  0x10   :  { %99 = vmatpush.msra.mxu1 %v86_v7  ;;  %v121_v29 = vld [vmem:[%s398_s5 + $0x28] sm:$0xff]  ;;  %v120_v30 = vld [vmem:[%s398_s5 + $0x20] sm:$0xff]  ;;  %v119_v31 = vld [vmem:[%s398_s5 + $0x18] sm:$0xff] }
  0x11   :  { %138 = vmatpush.msra.mxu2 %v129_v21  ;;  %v180_v32 = vld [vmem:[%s395_s2] ss:$0 sm:$0xff]  ;;  %v118_v36 = vld [vmem:[%s398_s5 + $0x10] sm:$0xff]  ;;  %v117_v37 = vld [vmem:[%s398_s5 + $0x8] sm:$0xff] }
  0x12   :  { %100 = vmatpush.msra.mxu1 %v85_v8  ;;  %v116_v38 = vld [vmem:[%s398_s5] sm:$0xff] }
  0x13   :  { %139 = vmatpush.msra.mxu2 %v128_v22  ;;  %v181_v39 = vld [vmem:[%s397_s4] ss:$0 sm:$0xff] }
  0x14   :  { %101 = vmatpush.msra.mxu1 %v84_v9  ;;  %v182_v43 = vld [vmem:[%s399_s6] ss:$0 sm:$0xff] }
  0x15   :  { %140 = vmatpush.msra.mxu2 %v127_v23 }
  0x16   :  { %102 = vmatpush.msra.mxu1 %v83_v10 }
  0x17   :  { %141 = vmatpush.msra.mxu2 %v126_v24 }
  0x18   :  { %103 = vmatpush.msra.mxu1 %v82_v11 }
  0x19   :  { %142 = vmatpush.msra.mxu2 %v125_v25 }
  0x1a   :  { %104 = vmatpush.msra.mxu1 %v81_v12 }
  0x1b   :  { %143 = vmatpush.msra.mxu2 %v124_v26 }
  0x1c   :  { %105 = vmatpush.msra.mxu1 %v80_v13 }
  0x1d   :  { %144 = vmatpush.msra.mxu2 %v123_v27 }
  0x1e   :  { %106 = vmatpush.msra.mxu1 %v79_v14 }
  0x1f   :  { %145 = vmatpush.msra.mxu2 %v122_v28 }
  0x20   :  { %107 = vmatpush.msra.mxu1 %v78_v15 }
  0x21   :  { %146 = vmatpush.msra.mxu2 %v121_v29 }
  0x22   :  { %108 = vmatpush.msra.mxu1 %v77_v16 }
  0x23   :  { %147 = vmatpush.msra.mxu2 %v120_v30 }
  0x24   :  { %109 = vmatpush.msra.mxu1 %v76_v17 }
  0x25   :  { %148 = vmatpush.msra.mxu2 %v119_v31 }
  0x26   :  { %110 = vmatpush.msra.mxu1 %v75_v18 }
  0x27   :  { %149 = vmatpush.msra.mxu2 %v118_v36 }
  0x29   :  { %150 = vmatpush.msra.mxu2 %v117_v37 }
  0x2b   :  { %151 = vmatpush.msra.mxu2 %v116_v38 }
  0x87   :  { %v71_v33 = vpop.f32.mrf.mxu0 }
  0x88   :  { %v72_v34 = vadd.f32 %v180_v32, %v71_v33 }
  0x8a   :  { %v74_v35 = vmax.f32 %v72_v34, 0.0 }
  0x8c   :  { %111 = vmatmul.f32.vlgmr.msra.gmra.mxu1 %v74_v35 }
 0x109   :  { %v112_v40 = vpop.f32.mrf.mxu1 }
 0x10a   :  { %v113_v41 = vadd.f32 %v181_v39, %v112_v40 }
 0x10c   :  { %v115_v42 = vmax.f32 %v113_v41, 0.0 }
 0x10e   :  { %152 = vmatmul.f32.vlgmr.msra.gmra.mxu2 %v115_v42 }
 0x191   :  { %v153_v44 = vpop.f32.mrf.mxu2 }
 0x192   :  { %v154_v45 = vadd.f32 %v182_v43, %v153_v44 }
 0x194   :  { %157 = vst.msk [vmem:[#allocation5] sm:$0xff] %vm156_vm1, %v154_v45 }
 0x195   :  { %168 = dma.vmem_to_hbm [thread:$0]  %s164_s26, 128, %s166_s29, [#allocation4]  }
 0x196   :  { %233 = dma.done.wait [#allocation4], 128  }
 0x197   :  { %234 = vsyncadd [#allocation4], 4294967168 }
 0x198   :  { %173 = vsyncpa [#allocation3], 1 }
 0x199   :  { %174 = vsyncpa [#allocation4], 1 }

// kernel: tpu_custom_call.1
= control target key start
LH: loop header
LB: loop body
LE: loop exit
PB: predicated region body
PF: predicated region fallthrough
CT: control target
= control target key end

     0   :  { %12 = vsyncpa [#allocation3], 0  ;;  %s393_s0 = inlined_call_operand.vmem [shape: f32[8,16], index: 0, kind: input, shape index: {}]   ;;  %s394_s1 = inlined_call_operand.hbm [shape: f32[16,128], index: 1, kind: input, shape index: {}]   ;;  %s395_s2 = inlined_call_operand.vmem [shape: f32[1,128], index: 2, kind: input, shape index: {}]   ;;  %s396_s3 = inlined_call_operand.vmem [shape: f32[128,128], index: 3, kind: input, shape index: {}]   ;;  %s397_s4 = inlined_call_operand.vmem [shape: f32[1,128], index: 4, kind: input, shape index: {}]   ;;  %s398_s5 = inlined_call_operand.vmem [shape: f32[128,8], index: 5, kind: input, shape index: {}]   ;;  %s399_s6 = inlined_call_operand.vmem [shape: f32[1,8], index: 6, kind: input, shape index: {}]   ;;  %s400_s7 = inlined_call_operand.hbm [shape: f32[8,8], index: 7, kind: output, shape index: {}]  }
   0x1   :  { %13 = vsyncpa [#allocation4], 0  ;;  %s20_s26 = sshll.u32 %s394_s1, 4  ;;  %s235_s27 = smov [#allocation2]   ;;  %s21_s26 = int_to_ptr.hbm [resolvable:$true] %s20_s26 }
   0x2   :  { %s22_s28 = sshll.u32 %s235_s27, 4  ;;  %s236_s29 = smov 128   ;;  %s23_s28 = int_to_ptr.vmem [resolvable:$true] %s22_s28 }
   0x3   :  { %s237_s30 = smov 8  }
   0x4   :  { %28 = dma.hbm_to_vmem [thread:$0]  %s21_s26, 256, %s23_s28, [#allocation3], %s236_s29, %s236_s29, %s237_s30  }
   0x5   :  { %231 = dma.done.wait [#allocation3], 256  }
   0x6   :  { %232 = vsyncadd [#allocation3], 4294967040  ;;  %v45_v0 = vld [vmem:[#allocation2 + $0x8] sm:$0xff]  ;;  %v44_v1 = vld [vmem:[#allocation2] sm:$0xff]  ;;  %vm50_vm0 = vcmask 130048   ;;  %s238_s25 = smov [#allocation5]  }
   0x7   :  { %68 = vmatpush.msra.mxu0 %v45_v0  ;;  %v43_v2 = vld [vmem:[%s393_s0] sm:$0xff]  ;;  %v90_v3 = vld [vmem:[%s396_s3 + $0x78] sm:$0xff]  ;;  %v89_v4 = vld [vmem:[%s396_s3 + $0x70] sm:$0xff]  ;;  %s163_s26 = sshll.u32 %s238_s25, 4  ;;  %s165_s29 = sshll.u32 %s400_s7, 4  ;;  %vm156_vm1 = vcmask 64512   ;;  %s164_s26 = int_to_ptr.vmem [resolvable:$true] %s163_s26  ;;  %s166_s29 = int_to_ptr.hbm [resolvable:$true] %s165_s29 }
   0x8   :  { %95 = vmatpush.msra.mxu1 %v90_v3  ;;  %v88_v5 = vld [vmem:[%s396_s3 + $0x68] sm:$0xff]  ;;  %v87_v6 = vld [vmem:[%s396_s3 + $0x60] sm:$0xff]  ;;  %v86_v7 = vld [vmem:[%s396_s3 + $0x58] sm:$0xff] }
   0x9   :  { %69 = vmatpush.msra.mxu0 %v44_v1  ;;  %v85_v8 = vld [vmem:[%s396_s3 + $0x50] sm:$0xff]  ;;  %v84_v9 = vld [vmem:[%s396_s3 + $0x48] sm:$0xff]  ;;  %v83_v10 = vld [vmem:[%s396_s3 + $0x40] sm:$0xff] }
   0xa   :  { %175 = vmatmul.msk.f32.vlgmr.msra.gmra.mxu0 %vm50_vm0, %v43_v2  ;;  %96 = vmatpush.msra.mxu1 %v89_v4  ;;  %v82_v11 = vld [vmem:[%s396_s3 + $0x38] sm:$0xff]  ;;  %v81_v12 = vld [vmem:[%s396_s3 + $0x30] sm:$0xff]  ;;  %v80_v13 = vld [vmem:[%s396_s3 + $0x28] sm:$0xff] }
   0xb   :  { %v79_v14 = vld [vmem:[%s396_s3 + $0x20] sm:$0xff]  ;;  %v78_v15 = vld [vmem:[%s396_s3 + $0x18] sm:$0xff]  ;;  %v77_v16 = vld [vmem:[%s396_s3 + $0x10] sm:$0xff] }
   0xc   :  { %97 = vmatpush.msra.mxu1 %v88_v5  ;;  %v76_v17 = vld [vmem:[%s396_s3 + $0x8] sm:$0xff]  ;;  %v75_v18 = vld [vmem:[%s396_s3] sm:$0xff]  ;;  %v131_v19 = vld [vmem:[%s398_s5 + $0x78] sm:$0xff] }
   0xd   :  { %v130_v20 = vld [vmem:[%s398_s5 + $0x70] sm:$0xff]  ;;  %136 = vmatpush.msra.mxu2 %v131_v19  ;;  %v129_v21 = vld [vmem:[%s398_s5 + $0x68] sm:$0xff]  ;;  %v128_v22 = vld [vmem:[%s398_s5 + $0x60] sm:$0xff] }
   0xe   :  { %98 = vmatpush.msra.mxu1 %v87_v6  ;;  %v127_v23 = vld [vmem:[%s398_s5 + $0x58] sm:$0xff]  ;;  %v126_v24 = vld [vmem:[%s398_s5 + $0x50] sm:$0xff]  ;;  %v125_v25 = vld [vmem:[%s398_s5 + $0x48] sm:$0xff] }
   0xf   :  { %137 = vmatpush.msra.mxu2 %v130_v20  ;;  %v124_v26 = vld [vmem:[%s398_s5 + $0x40] sm:$0xff]  ;;  %v123_v27 = vld [vmem:[%s398_s5 + $0x38] sm:$0xff]  ;;  %v122_v28 = vld [vmem:[%s398_s5 + $0x30] sm:$0xff] }
  0x10   :  { %99 = vmatpush.msra.mxu1 %v86_v7  ;;  %v121_v29 = vld [vmem:[%s398_s5 + $0x28] sm:$0xff]  ;;  %v120_v30 = vld [vmem:[%s398_s5 + $0x20] sm:$0xff]  ;;  %v119_v31 = vld [vmem:[%s398_s5 + $0x18] sm:$0xff] }
  0x11   :  { %138 = vmatpush.msra.mxu2 %v129_v21  ;;  %v180_v32 = vld [vmem:[%s395_s2] ss:$0 sm:$0xff]  ;;  %v118_v36 = vld [vmem:[%s398_s5 + $0x10] sm:$0xff]  ;;  %v117_v37 = vld [vmem:[%s398_s5 + $0x8] sm:$0xff] }
  0x12   :  { %100 = vmatpush.msra.mxu1 %v85_v8  ;;  %v116_v38 = vld [vmem:[%s398_s5] sm:$0xff] }
  0x13   :  { %139 = vmatpush.msra.mxu2 %v128_v22  ;;  %v181_v39 = vld [vmem:[%s397_s4] ss:$0 sm:$0xff] }
  0x14   :  { %101 = vmatpush.msra.mxu1 %v84_v9  ;;  %v182_v43 = vld [vmem:[%s399_s6] ss:$0 sm:$0xff] }
  0x15   :  { %140 = vmatpush.msra.mxu2 %v127_v23 }
  0x16   :  { %102 = vmatpush.msra.mxu1 %v83_v10 }
  0x17   :  { %141 = vmatpush.msra.mxu2 %v126_v24 }
  0x18   :  { %103 = vmatpush.msra.mxu1 %v82_v11 }
  0x19   :  { %142 = vmatpush.msra.mxu2 %v125_v25 }
  0x1a   :  { %104 = vmatpush.msra.mxu1 %v81_v12 }
  0x1b   :  { %143 = vmatpush.msra.mxu2 %v124_v26 }
  0x1c   :  { %105 = vmatpush.msra.mxu1 %v80_v13 }
  0x1d   :  { %144 = vmatpush.msra.mxu2 %v123_v27 }
  0x1e   :  { %106 = vmatpush.msra.mxu1 %v79_v14 }
  0x1f   :  { %145 = vmatpush.msra.mxu2 %v122_v28 }
  0x20   :  { %107 = vmatpush.msra.mxu1 %v78_v15 }
  0x21   :  { %146 = vmatpush.msra.mxu2 %v121_v29 }
  0x22   :  { %108 = vmatpush.msra.mxu1 %v77_v16 }
  0x23   :  { %147 = vmatpush.msra.mxu2 %v120_v30 }
  0x24   :  { %109 = vmatpush.msra.mxu1 %v76_v17 }
  0x25   :  { %148 = vmatpush.msra.mxu2 %v119_v31 }
  0x26   :  { %110 = vmatpush.msra.mxu1 %v75_v18 }
  0x27   :  { %149 = vmatpush.msra.mxu2 %v118_v36 }
  0x29   :  { %150 = vmatpush.msra.mxu2 %v117_v37 }
  0x2b   :  { %151 = vmatpush.msra.mxu2 %v116_v38 }
  0x87   :  { %v71_v33 = vpop.f32.mrf.mxu0 }
  0x88   :  { %v72_v34 = vadd.f32 %v180_v32, %v71_v33 }
  0x8a   :  { %v74_v35 = vmax.f32 %v72_v34, 0.0 }
  0x8c   :  { %111 = vmatmul.f32.vlgmr.msra.gmra.mxu1 %v74_v35 }
 0x109   :  { %v112_v40 = vpop.f32.mrf.mxu1 }
 0x10a   :  { %v113_v41 = vadd.f32 %v181_v39, %v112_v40 }
 0x10c   :  { %v115_v42 = vmax.f32 %v113_v41, 0.0 }
 0x10e   :  { %152 = vmatmul.f32.vlgmr.msra.gmra.mxu2 %v115_v42 }
 0x191   :  { %v153_v44 = vpop.f32.mrf.mxu2 }
 0x192   :  { %v154_v45 = vadd.f32 %v182_v43, %v153_v44 }
 0x194   :  { %157 = vst.msk [vmem:[#allocation5] sm:$0xff] %vm156_vm1, %v154_v45 }
 0x195   :  { %168 = dma.vmem_to_hbm [thread:$0]  %s164_s26, 128, %s166_s29, [#allocation4]  }
 0x196   :  { %233 = dma.done.wait [#allocation4], 128  }
 0x197   :  { %234 = vsyncadd [#allocation4], 4294967168 }
 0x198   :  { %173 = vsyncpa [#allocation3], 1 }
 0x199   :  { %174 = vsyncpa [#allocation4], 1 }

</bundles_post_ra>
